<compile_context>
chip_gen: v6e
topology: v6e:2x2x1
jax: 0.10.0
libtpu: 0.0.40
codegen_flags: <defaults>
</compile_context>

<pallas_src>
import functools

import jax
import jax.numpy as jnp
from jax.experimental import pallas as pl
from jax.experimental.pallas import tpu as pltpu


def _ffn_kernel(x_ref, w1_ref, b1_ref, w2_ref, b2_ref, o_ref, acc_ref):
    """Grid = (row_tiles, dff_tiles).  acc_ref: (tm, d_model) f32 scratch."""
    k = pl.program_id(1)

    @pl.when(k == 0)
    def _():
        # Fold the b2 bias into the accumulator initialization.
        acc_ref[...] = jnp.broadcast_to(b2_ref[...], acc_ref.shape)

    # First matmul on this d_ff slice: (tm, d_model) @ (d_model, tk) -> f32
    h = jnp.dot(x_ref[...], w1_ref[...], preferred_element_type=jnp.float32)
    h = jnp.maximum(h + b1_ref[...], 0.0)

    # TODO(synk): dropout is identity (eval-mode semantics); training-mode
    # masking would use pltpu.prng_seed / pltpu.stateful_bernoulli.

    # Second matmul, accumulated over the d_ff axis:
    # (tm, tk) @ (tk, d_model) -> (tm, d_model) f32
    acc_ref[...] += jnp.dot(h.astype(w2_ref.dtype), w2_ref[...],
                            preferred_element_type=jnp.float32)

    @pl.when(k == pl.num_programs(1) - 1)
    def _():
        o_ref[...] = acc_ref[...].astype(o_ref.dtype)


def _round_up(v, m):
    return ((v + m - 1) // m) * m


@functools.partial(jax.jit, static_argnames=("tm", "tk", "compute_dtype"))
def positionwise_feed_forward(x, w1, b1, w2, b2, *, tm=256, tk=512,
                              compute_dtype=jnp.bfloat16):
    """x: (batch, seq, d_model). w1: (d_ff, d_model), b1: (d_ff,),
    w2: (d_model, d_ff), b2: (d_model,)  -- PyTorch nn.Linear layout."""
    batch, seq, d_model = x.shape
    d_ff = w1.shape[0]
    n = batch * seq
    assert tm % 8 == 0 and tk % 128 == 0

    # Padded / effective tile sizes (lane dims -> multiples of 128,
    # rows -> multiple of the row tile).
    d_model_p = _round_up(d_model, 128)
    tk_eff = min(tk, _round_up(d_ff, 128))
    d_ff_p = _round_up(d_ff, tk_eff)
    tm_eff = min(tm, _round_up(n, 8))
    n_p = _round_up(n, tm_eff)

    # Layout prep: flatten rows, pre-transpose weights, zero-pad, cast matmul
    # operands to bf16 (biases stay f32 and are added to the f32 accumulator).
    x2d = jnp.pad(x.reshape(n, d_model),
                  ((0, n_p - n), (0, d_model_p - d_model)))
    w1_t = jnp.pad(w1.T, ((0, d_model_p - d_model), (0, d_ff_p - d_ff)))
    w2_t = jnp.pad(w2.T, ((0, d_ff_p - d_ff), (0, d_model_p - d_model)))
    b1_2d = jnp.pad(b1.reshape(1, d_ff), ((0, 0), (0, d_ff_p - d_ff)))
    b2_2d = jnp.pad(b2.reshape(1, d_model), ((0, 0), (0, d_model_p - d_model)))

    x2d = x2d.astype(compute_dtype)
    w1_t = w1_t.astype(compute_dtype)
    w2_t = w2_t.astype(compute_dtype)
    b1_2d = b1_2d.astype(jnp.float32)
    b2_2d = b2_2d.astype(jnp.float32)

    grid = (n_p // tm_eff, d_ff_p // tk_eff)

    out = pl.pallas_call(
        _ffn_kernel,
        out_shape=jax.ShapeDtypeStruct((n_p, d_model_p), x.dtype),
        grid_spec=pltpu.PrefetchScalarGridSpec(
            num_scalar_prefetch=0,
            grid=grid,
            in_specs=[
                pl.BlockSpec((tm_eff, d_model_p), lambda i, k: (i, 0)),   # x rows
                pl.BlockSpec((d_model_p, tk_eff), lambda i, k: (0, k)),   # W1^T cols
                pl.BlockSpec((1, tk_eff), lambda i, k: (0, k)),           # b1 slice
                pl.BlockSpec((tk_eff, d_model_p), lambda i, k: (k, 0)),   # W2^T rows
                pl.BlockSpec((1, d_model_p), lambda i, k: (0, 0)),        # b2
            ],
            out_specs=pl.BlockSpec((tm_eff, d_model_p), lambda i, k: (i, 0)),
            scratch_shapes=[pltpu.VMEM((tm_eff, d_model_p), jnp.float32)],
        ),
        compiler_params=pltpu.CompilerParams(
            dimension_semantics=("parallel", "arbitrary"),
            # Above the 32 MiB scoped default on v5e/v6e, equal to physical
            # VMEM on v7x; actual usage is far smaller because the weights
            # stream as tk-sized tiles.
            vmem_limit_bytes=64 << 20,
        ),
    )(x2d, w1_t, b1_2d, w2_t, b2_2d)

    return out[:n, :d_model].reshape(batch, seq, d_model)


def _reference(x, w1, b1, w2, b2):
    h = jnp.maximum(jnp.einsum("bsd,fd->bsf", x, w1) + b1, 0.0)
    return jnp.einsum("bsf,df->bsd", h, w2) + b2


if __name__ == "__main__":
    # Small but lane-dense shapes; tm/tk chosen so both grid axes have >1 step
    # (2 row tiles x 2 d_ff reduction tiles) to exercise the accumulator path.
    batch, seq, d_model, d_ff = 4, 64, 128, 256

    key = jax.random.PRNGKey(0)
    kx, k1, kb1, k2, kb2 = jax.random.split(key, 5)

    x = jax.random.normal(kx, (batch, seq, d_model), dtype=jnp.float32)
    # Deterministic parameter init (shapes follow nn.Linear: (out, in) weights).
    w1 = jax.random.normal(k1, (d_ff, d_model), dtype=jnp.float32) * 0.05
    b1 = jax.random.normal(kb1, (d_ff,), dtype=jnp.float32) * 0.05
    w2 = jax.random.normal(k2, (d_model, d_ff), dtype=jnp.float32) * 0.05
    b2 = jax.random.normal(kb2, (d_model,), dtype=jnp.float32) * 0.05

    out = positionwise_feed_forward(x, w1, b1, w2, b2, tm=128, tk=128)
    out = jax.block_until_ready(out)

    ref = _reference(x, w1, b1, w2, b2)
    assert out.shape == (batch, seq, d_model)
    # bf16 matmul inputs with f32 accumulation -> bf16-level tolerance.
    assert jnp.allclose(out, ref, atol=3e-2, rtol=3e-2), "mismatch vs reference"

    print("KERNEL_OK")
</pallas_src>

<mosaic_0001>
module attributes {stable_mosaic.version = 11 : i64} {
  func.func @_ffn_kernel(%arg0: i32, %arg1: i32, %arg2: memref<128x128xbf16, #tpu.memory_space<vmem>>, %arg3: memref<128x128xbf16, #tpu.memory_space<vmem>>, %arg4: memref<1x128xf32, #tpu.memory_space<vmem>>, %arg5: memref<128x128xbf16, #tpu.memory_space<vmem>>, %arg6: memref<1x128xf32, #tpu.memory_space<vmem>>, %arg7: memref<128x128xf32, #tpu.memory_space<vmem>>, %arg8: memref<128x128xf32, #tpu.memory_space<vmem>>) attributes {dimension_semantics = [#tpu.dimension_semantics<parallel>, #tpu.dimension_semantics<arbitrary>], iteration_bounds = array<i64: 2, 2>, scalar_prefetch = 0 : i64, scratch_operands = 1 : i64, tpu.core_type = #tpu.core_type<tc>, window_params = [{transform_indices = @transform_0, window_bounds = array<i64: 128, 128>}, {transform_indices = @transform_1, window_bounds = array<i64: 128, 128>}, {transform_indices = @transform_2, window_bounds = array<i64: 1, 128>}, {transform_indices = @transform_3, window_bounds = array<i64: 128, 128>}, {pipeline_mode = #tpu.pipeline_mode<synchronous>, transform_indices = @transform_4, window_bounds = array<i64: 1, 128>}, {transform_indices = @transform_5, window_bounds = array<i64: 128, 128>}]} {
    %c0_i32 = arith.constant 0 : i32
    %0 = arith.cmpi eq, %arg1, %c0_i32 : i32
    %1 = arith.extui %0 : i1 to i32
    %c0_i32_0 = arith.constant 0 : i32
    %2 = arith.cmpi ne, %1, %c0_i32_0 : i32
    scf.if %2 {
      %c0_15 = arith.constant 0 : index
      %c0_16 = arith.constant 0 : index
      %20 = vector.load %arg6[%c0_15, %c0_16] : memref<1x128xf32, #tpu.memory_space<vmem>>, vector<1x128xf32>
      %21 = vector.shape_cast %20 : vector<1x128xf32> to vector<1x128xf32>
      %22 = vector.broadcast %21 : vector<1x128xf32> to vector<128x128xf32>
      %c0_17 = arith.constant 0 : index
      %c0_18 = arith.constant 0 : index
      %23 = vector.load %arg8[%c0_17, %c0_18] : memref<128x128xf32, #tpu.memory_space<vmem>>, vector<128x128xf32>
      tpu.vector_store %arg8[%c0_17, %c0_18], %22 {strides = array<i32>} : memref<128x128xf32, #tpu.memory_space<vmem>>, vector<128x128xf32>,
    } else {
    }
    %c0 = arith.constant 0 : index
    %c0_1 = arith.constant 0 : index
    %3 = vector.load %arg2[%c0, %c0_1] : memref<128x128xbf16, #tpu.memory_space<vmem>>, vector<128x128xbf16>
    %c0_2 = arith.constant 0 : index
    %c0_3 = arith.constant 0 : index
    %4 = vector.load %arg3[%c0_2, %c0_3] : memref<128x128xbf16, #tpu.memory_space<vmem>>, vector<128x128xbf16>
    %cst = arith.constant dense<0.000000e+00> : vector<128x128xf32>
    %5 = tpu.matmul %3, %4, %cst {dimension_numbers = #tpu.dot_dimension_numbers<[1], [0], [0], [1], [0, 0, 1, 1], [], []>} : vector<128x128xbf16>, vector<128x128xbf16>, vector<128x128xf32> -> vector<128x128xf32>
    %c0_4 = arith.constant 0 : index
    %c0_5 = arith.constant 0 : index
    %6 = vector.load %arg4[%c0_4, %c0_5] : memref<1x128xf32, #tpu.memory_space<vmem>>, vector<1x128xf32>
    %7 = vector.broadcast %6 : vector<1x128xf32> to vector<128x128xf32>
    %8 = arith.addf %5, %7 : vector<128x128xf32>
    %cst_6 = arith.constant 0.000000e+00 : f32
    %9 = vector.broadcast %cst_6 : f32 to vector<128x128xf32>
    %10 = arith.maximumf %8, %9 : vector<128x128xf32>
    %c0_7 = arith.constant 0 : index
    %c0_8 = arith.constant 0 : index
    %11 = vector.load %arg8[%c0_7, %c0_8] : memref<128x128xf32, #tpu.memory_space<vmem>>, vector<128x128xf32>
    %12 = arith.truncf %10 : vector<128x128xf32> to vector<128x128xbf16>
    %c0_9 = arith.constant 0 : index
    %c0_10 = arith.constant 0 : index
    %13 = vector.load %arg5[%c0_9, %c0_10] : memref<128x128xbf16, #tpu.memory_space<vmem>>, vector<128x128xbf16>
    %cst_11 = arith.constant dense<0.000000e+00> : vector<128x128xf32>
    %14 = tpu.matmul %12, %13, %cst_11 {dimension_numbers = #tpu.dot_dimension_numbers<[1], [0], [0], [1], [0, 0, 1, 1], [], []>} : vector<128x128xbf16>, vector<128x128xbf16>, vector<128x128xf32> -> vector<128x128xf32>
    %15 = arith.addf %11, %14 : vector<128x128xf32>
    %c0_12 = arith.constant 0 : index
    %c0_13 = arith.constant 0 : index
    %16 = vector.load %arg8[%c0_12, %c0_13] : memref<128x128xf32, #tpu.memory_space<vmem>>, vector<128x128xf32>
    tpu.vector_store %arg8[%c0_12, %c0_13], %15 {strides = array<i32>} : memref<128x128xf32, #tpu.memory_space<vmem>>, vector<128x128xf32>,
    %c1_i32 = arith.constant 1 : i32
    %17 = arith.cmpi eq, %arg1, %c1_i32 : i32
    %18 = arith.extui %17 : i1 to i32
    %c0_i32_14 = arith.constant 0 : i32
    %19 = arith.cmpi ne, %18, %c0_i32_14 : i32
    scf.if %19 {
      %c0_15 = arith.constant 0 : index
      %c0_16 = arith.constant 0 : index
      %20 = vector.load %arg8[%c0_15, %c0_16] : memref<128x128xf32, #tpu.memory_space<vmem>>, vector<128x128xf32>
      %c0_17 = arith.constant 0 : index
      %c0_18 = arith.constant 0 : index
      %21 = vector.load %arg7[%c0_17, %c0_18] : memref<128x128xf32, #tpu.memory_space<vmem>>, vector<128x128xf32>
      tpu.vector_store %arg7[%c0_17, %c0_18], %20 {strides = array<i32>} : memref<128x128xf32, #tpu.memory_space<vmem>>, vector<128x128xf32>,
    } else {
    }
    return
  }
  func.func @transform_0(%arg0: i32, %arg1: i32) -> (i32, i32) {
    %c0_i32 = arith.constant 0 : i32
    %c0_i32_0 = arith.constant 0 : i32
    return %arg0, %c0_i32 : i32, i32
  }
  func.func @transform_1(%arg0: i32, %arg1: i32) -> (i32, i32) {
    %c0_i32 = arith.constant 0 : i32
    %c0_i32_0 = arith.constant 0 : i32
    return %c0_i32, %arg1 : i32, i32
  }
  func.func @transform_2(%arg0: i32, %arg1: i32) -> (i32, i32) {
    %c0_i32 = arith.constant 0 : i32
    %c0_i32_0 = arith.constant 0 : i32
    return %c0_i32, %arg1 : i32, i32
  }
  func.func @transform_3(%arg0: i32, %arg1: i32) -> (i32, i32) {
    %c0_i32 = arith.constant 0 : i32
    %c0_i32_0 = arith.constant 0 : i32
    return %arg1, %c0_i32 : i32, i32
  }
  func.func @transform_4(%arg0: i32, %arg1: i32) -> (i32, i32) {
    %c0_i32 = arith.constant 0 : i32
    %c0_i32_0 = arith.constant 0 : i32
    %c0_i32_1 = arith.constant 0 : i32
    return %c0_i32, %c0_i32_0 : i32, i32
  }
  func.func @transform_5(%arg0: i32, %arg1: i32) -> (i32, i32) {
    %c0_i32 = arith.constant 0 : i32
    %c0_i32_0 = arith.constant 0 : i32
    return %arg0, %c0_i32 : i32, i32
  }
}

</mosaic_0001>

<bundles_post_ra>
// kernel: positionwise_feed_forward.1
= control target key start
LH: loop header
LB: loop body
LE: loop exit
PB: predicated region body
PF: predicated region fallthrough
CT: control target
= control target key end

     0   :  { %s1715_s0 = inlined_call_operand.vmem [shape: bf16[256,128], index: 0, kind: input, shape index: {}]   ;;  %s1716_s1 = inlined_call_operand.vmem [shape: bf16[128,256], index: 1, kind: input, shape index: {}]   ;;  %s1717_s2 = inlined_call_operand.vmem [shape: f32[1,256], index: 2, kind: input, shape index: {}]   ;;  %s1718_s3 = inlined_call_operand.vmem [shape: bf16[256,128], index: 3, kind: input, shape index: {}]   ;;  %s1719_s4 = inlined_call_operand.vmem [shape: f32[1,128], index: 4, kind: input, shape index: {}]   ;;  %s1720_s5 = inlined_call_operand.hbm [shape: f32[256,128], index: 5, kind: output, shape index: {}]  }
   0x1   :  { %1727 = sst [smem:[#allocation14_spill]] %s1716_s1 }
   0x2   :  { %10 = vsyncpa [#allocation5], 0 }
   0x3   :  { %12 = vsyncpa [#allocation5 + $0x1], 0  ;;  %s1451_s18 = smov 0   ;;  %s1453_s19 = smov 0  }
   0x4   :  { %s1455_s20 = smov 0   ;;  %s1457_s21 = smov 0  }
   0x5   :  { %s1459_s22 = smov 0   ;;  %s1461_s23 = smov 0  }
   0x6   :  { %s1463_s24 = smov 0   ;;  %s1465_s25 = smov 0  }
   0x7   :  { %s1467_s26 = smov 0   ;;  %s1469_s27 = smov 0  }
   0x8 LB: > { %1728 = sst [smem:[#allocation7_spill]] %s1396_s22  ;;  %s1052_s28 = sadd.s32 4294967295, %s1416_s27   ;;  %s1416_s27 = sphi %s1469_s27, %s18_s27   ;;  %s1412_s26 = sphi %s1467_s26, %s1746_s26   ;;  %s1408_s25 = sphi %s1465_s25, %s1745_s25   ;;  %s1404_s24 = sphi %s1463_s24, %s1744_s24   ;;  %s1400_s23 = sphi %s1461_s23, %s1750_s23   ;;  %s1396_s22 = sphi %s1459_s22, %s1742_s22   ;;  %s1392_s21 = sphi %s1457_s21, %s1741_s21   ;;  %s1388_s20 = sphi %s1455_s20, %s1749_s20   ;;  %s1384_s19 = sphi %s1453_s19, %s1748_s19   ;;  %s1380_s18 = sphi %s1451_s18, %s1747_s18  }
   0x9   : > { %1729 = sst [smem:[#allocation8_spill]] %s1408_s25  ;;  %s1053_s29 = sadd.s32 4294967294, %s1416_s27  }
   0xa   : > { %1730 = sst [smem:[#allocation9_spill]] %s1412_s26  ;;  %s27_s30 = sadd.s32 1, %s1408_s25 }
   0xb   : > { %s30_s6 = sadd.s32 1, %s1412_s26  ;;  %p28_p0 = scmp.ge.s32.totalorder %s27_s30, 2 }
   0xc   : > { %s63_s7 = sadd.s32 1, %s1396_s22  ;;  %p70_p1 = scmp.ne.s32.totalorder %s1396_s22, %s1392_s21 }
   0xd   : > { %p71_p2 = scmp.eq.s32.totalorder %s1416_s27, 0  ;;  %s1752_s30 = smov (%p28_p0, %s27_s30), 0 }
   0xe   : > { %1731 = sst [smem:[#allocation10_spill]] %s1752_s30  ;;  %s1754_s6 = smov (!%p28_p0, %s30_s6), %s1412_s26 }
   0xf   : > { %s60_s8 = ssub.s32 %s1408_s25, %s1752_s30  ;;  %p1514_p3 = por %p71_p2, %p70_p1 }
  0x10   : > { %p32_p4 = scmp.ge.s32.totalorder %s1754_s6, 2  ;;  %p61_p5 = scmp.eq.s32.totalorder %s60_s8, 0 }
  0x11   : > { %s162_s10 = sadd.s32 1, %s1388_s20  ;;  %p172_p6 = scmp.ne.s32.totalorder %s1388_s20, %s1384_s19 }
  0x12   : > { %s1756_s6 = smov (%p32_p4, %s1754_s6), 0  ;;  %p173_p7 = scmp.eq.s32.totalorder %s1052_s28, 3 }
  0x13   : > { %1733 = sst [smem:[#allocation11_spill]] %s1756_s6  ;;  %s159_s12 = ssub.s32 %s1412_s26, %s1756_s6 }
  0x14   : > { %s1524_s11 = scalar_select %p61_p5, %s1396_s22, %s63_s7  }
  0x15   : > { %p160_p8 = scmp.eq.s32.totalorder %s159_s12, 0  ;;  %p178_p9 = scmp.ne.s32.totalorder %s1384_s19, %s1380_s18 }
  0x16   : > { %1734 = sst [smem:[#allocation12_spill]] %s1524_s11  ;;  %p1530_p10 = por %p173_p7, %p172_p6 }
  0x17   : > { %p179_p11 = scmp.eq.s32.totalorder %s1053_s29, 3  ;;  %p1055_p13 = scmp.ge.s32.totalorder %s1416_s27, 4 }
  0x18   : > { %s1535_s14 = scalar_select %p160_p8, %s1388_s20, %s162_s10  }
  0x19   : > { %p1537_p12 = por %p179_p11, %p178_p9  ;;  %198 = sbr.rel (%p1055_p13) target bundleno = 50 (0x32), region = 20 }
  0x1a   : > { %1736 = sst [smem:[#allocation13_spill]] %s1535_s14 }
  0x1e   : > { %210 = sbr.rel (!%p1514_p3) target bundleno = 50 (0x32), region = 28  ;;  %s212_s16 = sand.u32 (%p1514_p3), 1, %s1396_s22  }
  0x1f   : > { %s1057_s17 = sshll.u32 (%p1514_p3), %s1408_s25, 2  ;;  %s1056_s28 = sshll.u32 (%p1514_p3), %s212_s16, 6 }
  0x20   : > { %s1738_s1 = sld [smem:[#allocation14_spill]] (%p1514_p3)  ;;  %s214_s9 = scalar_lea.vmem (%p1514_p3), [#allocation3], %s1056_s28 }
  0x26   : > { %s1549_s29 = scalar_lea.vmem %s1738_s1, %s1057_s17 }
  0x27   : > { %v233_v0 = vld [vmem:[%s1549_s29] sm:$0xf]  ;;  %v235_v1 = vld [vmem:[%s1549_s29 + $0x8] sm:$0xf]  ;;  %v237_v2 = vld [vmem:[%s1549_s29 + $0x10] sm:$0xf] }
  0x28   : > { %234 = vst [vmem:[%s214_s9] sm:$0xf] %v233_v0  ;;  %236 = vst [vmem:[%s214_s9 + $0x4] sm:$0xf] %v235_v1  ;;  %v239_v3 = vld [vmem:[%s1549_s29 + $0x18] sm:$0xf] }
  0x29   : > { %v241_v4 = vld [vmem:[%s1549_s29 + $0x20] sm:$0xf]  ;;  %238 = vst [vmem:[%s214_s9 + $0x8] sm:$0xf] %v237_v2  ;;  %240 = vst [vmem:[%s214_s9 + $0xc] sm:$0xf] %v239_v3 }
  0x2a   : > { %242 = vst [vmem:[%s214_s9 + $0x10] sm:$0xf] %v241_v4  ;;  %v243_v5 = vld [vmem:[%s1549_s29 + $0x28] sm:$0xf]  ;;  %v245_v6 = vld [vmem:[%s1549_s29 + $0x30] sm:$0xf] }
  0x2b   : > { %v247_v7 = vld [vmem:[%s1549_s29 + $0x38] sm:$0xf]  ;;  %244 = vst [vmem:[%s214_s9 + $0x14] sm:$0xf] %v243_v5  ;;  %246 = vst [vmem:[%s214_s9 + $0x18] sm:$0xf] %v245_v6 }
  0x2c   : > { %248 = vst [vmem:[%s214_s9 + $0x1c] sm:$0xf] %v247_v7  ;;  %v249_v8 = vld [vmem:[%s1549_s29 + $0x40] sm:$0xf]  ;;  %v251_v9 = vld [vmem:[%s1549_s29 + $0x48] sm:$0xf] }
  0x2d   : > { %v253_v10 = vld [vmem:[%s1549_s29 + $0x50] sm:$0xf]  ;;  %250 = vst [vmem:[%s214_s9 + $0x20] sm:$0xf] %v249_v8  ;;  %252 = vst [vmem:[%s214_s9 + $0x24] sm:$0xf] %v251_v9 }
  0x2e   : > { %254 = vst [vmem:[%s214_s9 + $0x28] sm:$0xf] %v253_v10  ;;  %v255_v11 = vld [vmem:[%s1549_s29 + $0x58] sm:$0xf]  ;;  %v257_v12 = vld [vmem:[%s1549_s29 + $0x60] sm:$0xf] }
  0x2f   : > { %v259_v13 = vld [vmem:[%s1549_s29 + $0x68] sm:$0xf]  ;;  %256 = vst [vmem:[%s214_s9 + $0x2c] sm:$0xf] %v255_v11  ;;  %258 = vst [vmem:[%s214_s9 + $0x30] sm:$0xf] %v257_v12 }
  0x30   : > { %260 = vst [vmem:[%s214_s9 + $0x34] sm:$0xf] %v259_v13  ;;  %v261_v14 = vld [vmem:[%s1549_s29 + $0x70] sm:$0xf]  ;;  %v263_v15 = vld [vmem:[%s1549_s29 + $0x78] sm:$0xf] }
  0x31   : > { %262 = vst [vmem:[%s214_s9 + $0x38] sm:$0xf] %v261_v14  ;;  %264 = vst [vmem:[%s214_s9 + $0x3c] sm:$0xf] %v263_v15 }
  0x32 PF: > { %p1058_p0 = scmp.ge.s32.totalorder %s1416_s27, 1  ;;  %p334_p1 = scmp.lt.s32.totalorder %s1416_s27, 5 }
  0x34   : > { %p335_p2 = pnand %p1058_p0, %p334_p1 }
  0x35   : > { %s341_s10 = sand.u32 (!%p335_p2), 1, %s1392_s21   ;;  %s1723_s12 = sand.u32 (!%p335_p2), 1, %s1384_s19  }
  0x36   : > { %338 = sbr.rel (%p335_p2) target bundleno = 578 (0x242), region = 77  ;;  %s1059_s16 = sshll.u32 (!%p335_p2), %s341_s10, 6 }
  0x37   : > { %s1060_s17 = sshll.u32 (!%p335_p2), %s1723_s12, 7  ;;  %s1061_s28 = sshll.u32 (!%p335_p2), %s1404_s24, 4 }
  0x38   : > { %p387_p3 = scmp.lt.s32.totalorder (!%p335_p2), %s1400_s23, 1  ;;  %p382_p4 = scmp.lt.s32.totalorder (!%p335_p2), %s1061_s28, 31 }
  0x39   : > { %s1063_s7 = sshll.u32 (!%p335_p2), %s1400_s23, 4  ;;  %s1593_s22 = scalar_lea.vmem (!%p335_p2), [#allocation3], %s1059_s16 }
  0x3a   : > { %p391_p5 = scmp.lt.s32.totalorder (!%p335_p2), %s1063_s7, 31  ;;  %s1595_s14 = scalar_lea.vmem (!%p335_p2), [#allocation4], %s1060_s17 }
  0x3b   : > { %s1577_s8 = scalar_select %p387_p3, %s1400_s23, 1 }
  0x3c   : > { %s1758_s28 = smov (!%p382_p4, %s1061_s28), 31  ;;  %s1760_s7 = smov (!%p391_p5, %s1063_s7), 31 }
  0x3d   : > { %s389_s1 = scalar_lea.vmem %s1717_s2, %s1577_s8  ;;  %s1062_s6 = sshll.u32 %s1758_s28, 2 }
  0x3e   : > { %s1586_s10 = scalar_lea.vmem %s1715_s0, %s1062_s6  ;;  %s1064_s12 = sshll.u32 %s1760_s7, 2 }
  0x3f   : > { %s1591_s11 = scalar_lea.vmem %s1718_s3, %s1064_s12  ;;  %p1065_p6 = scmp.ne.s32.totalorder %s1400_s23, 0 }
  0x41   : > { %401 = sbr.rel (%p1065_p6) target bundleno = 79 (0x4f), region = 85 }
  0x46   : > { %v1066_v16 = vld [vmem:[%s1719_s4] ss:$0 sm:$0xff] }
  0x47   : > { %409 = vst [vmem:[#allocation2 + $0x30] sm:$0xff] %v1066_v16  ;;  %410 = vst [vmem:[#allocation2] sm:$0xff] %v1066_v16 }
  0x48   : > { %411 = vst [vmem:[#allocation2 + $0x58] sm:$0xff] %v1066_v16  ;;  %412 = vst [vmem:[#allocation2 + $0x18] sm:$0xff] %v1066_v16 }
  0x49   : > { %413 = vst [vmem:[#allocation2 + $0x50] sm:$0xff] %v1066_v16  ;;  %414 = vst [vmem:[#allocation2 + $0x68] sm:$0xff] %v1066_v16 }
  0x4a   : > { %415 = vst [vmem:[#allocation2 + $0x8] sm:$0xff] %v1066_v16  ;;  %416 = vst [vmem:[#allocation2 + $0x48] sm:$0xff] %v1066_v16 }
  0x4b   : > { %417 = vst [vmem:[#allocation2 + $0x40] sm:$0xff] %v1066_v16  ;;  %418 = vst [vmem:[#allocation2 + $0x20] sm:$0xff] %v1066_v16 }
  0x4c   : > { %419 = vst [vmem:[#allocation2 + $0x10] sm:$0xff] %v1066_v16  ;;  %420 = vst [vmem:[#allocation2 + $0x38] sm:$0xff] %v1066_v16 }
  0x4d   : > { %421 = vst [vmem:[#allocation2 + $0x60] sm:$0xff] %v1066_v16  ;;  %422 = vst [vmem:[#allocation2 + $0x70] sm:$0xff] %v1066_v16 }
  0x4e   : > { %423 = vst [vmem:[#allocation2 + $0x78] sm:$0xff] %v1066_v16  ;;  %424 = vst [vmem:[#allocation2 + $0x28] sm:$0xff] %v1066_v16 }
  0x4f PF: > { %v1284_v17 = vld [vmem:[%s1593_s22 + $0x38] sm:$0xff]   ;;  %v1285_v18 = vld [vmem:[%s1593_s22 + $0x30] sm:$0xff]   ;;  %v1286_v19 = vld [vmem:[%s1593_s22 + $0x28] sm:$0xff]   ;;  %p1092_p7 = scmp.ne.s32.totalorder %s1400_s23, 1 }
  0x50   : > { %1131 = vmatprep.subr.bf16.mxu0 %v1284_v17  ;;  %v1287_v20 = vld [vmem:[%s1593_s22 + $0x20] sm:$0xff]   ;;  %v1288_v22 = vld [vmem:[%s1593_s22 + $0x18] sm:$0xff]   ;;  %v1289_v23 = vld [vmem:[%s1593_s22 + $0x10] sm:$0xff]  }
  0x51   : > { %1132 = vmatpush3.bf16.msra.mxu0 %v1284_v17  ;;  %v1292_v21 = vld [vmem:[%s1586_s10] sm:$0xff]   ;;  %v1300_v24 = vld [vmem:[%s1591_s11 + $0x38] sm:$0xff]   ;;  %v1301_v25 = vld [vmem:[%s1591_s11 + $0x30] sm:$0xff]  }
  0x52   : > { %1133 = vmatprep.subr.bf16.mxu0 %v1285_v18  ;;  %1147 = vmatprep.mubr.bf16.mxu0 %v1292_v21  ;;  %v1290_v26 = vld [vmem:[%s1593_s22 + $0x8] sm:$0xff]   ;;  %v1291_v28 = vld [vmem:[%s1593_s22] sm:$0xff]   ;;  %v1304_v30 = vld [vmem:[%s1591_s11 + $0x18] sm:$0xff]  }
  0x53   : > { %1163 = vmatprep.subr.bf16.mxu1 %v1300_v24  ;;  %v1302_v27 = vld [vmem:[%s1591_s11 + $0x28] sm:$0xff]   ;;  %v1303_v29 = vld [vmem:[%s1591_s11 + $0x20] sm:$0xff]   ;;  %v1294_v32 = vld [vmem:[%s1586_s10 + $0x10] sm:$0xff]  }
  0x54   : > { %1164 = vmatpush3.bf16.msra.mxu1 %v1300_v24  ;;  %v1293_v31 = vld [vmem:[%s1586_s10 + $0x8] sm:$0xff]   ;;  %v1295_v33 = vld [vmem:[%s1586_s10 + $0x18] sm:$0xff]   ;;  %v1296_v34 = vld [vmem:[%s1586_s10 + $0x20] sm:$0xff]  }
  0x55   : > { %1134 = vmatpush3.bf16.msra.mxu0 %v1285_v18  ;;  %1165 = vmatprep.subr.bf16.mxu1 %v1301_v25  ;;  %v1297_v35 = vld [vmem:[%s1586_s10 + $0x28] sm:$0xff]   ;;  %v1298_v36 = vld [vmem:[%s1586_s10 + $0x30] sm:$0xff]   ;;  %v1299_v37 = vld [vmem:[%s1586_s10 + $0x38] sm:$0xff]  }
  0x56   : > { %1135 = vmatprep.subr.bf16.mxu0 %v1286_v19  ;;  %v1305_v38 = vld [vmem:[%s1591_s11 + $0x10] sm:$0xff]   ;;  %v1306_v39 = vld [vmem:[%s1591_s11 + $0x8] sm:$0xff]   ;;  %v1307_v40 = vld [vmem:[%s1591_s11] sm:$0xff]  }
  0x57   : > { %v1067_v43 = vld [vmem:[%s389_s1] ss:$0 sm:$0xff] }
  0x58   : > { %1166 = vmatpush3.bf16.msra.mxu1 %v1301_v25 }
  0x59   : > { %1136 = vmatpush3.bf16.msra.mxu0 %v1286_v19  ;;  %1167 = vmatprep.subr.bf16.mxu1 %v1302_v27 }
  0x5a   : > { %1137 = vmatprep.subr.bf16.mxu0 %v1287_v20 }
  0x5c   : > { %1168 = vmatpush3.bf16.msra.mxu1 %v1302_v27 }
  0x5d   : > { %1138 = vmatpush3.bf16.msra.mxu0 %v1287_v20  ;;  %1169 = vmatprep.subr.bf16.mxu1 %v1303_v29 }
  0x5e   : > { %1139 = vmatprep.subr.bf16.mxu0 %v1288_v22 }
  0x60   : > { %1170 = vmatpush3.bf16.msra.mxu1 %v1303_v29 }
  0x61   : > { %1140 = vmatpush3.bf16.msra.mxu0 %v1288_v22  ;;  %1171 = vmatprep.subr.bf16.mxu1 %v1304_v30 }
  0x62   : > { %1141 = vmatprep.subr.bf16.mxu0 %v1289_v23 }
  0x64   : > { %1172 = vmatpush3.bf16.msra.mxu1 %v1304_v30 }
  0x65   : > { %1142 = vmatpush3.bf16.msra.mxu0 %v1289_v23  ;;  %1173 = vmatprep.subr.bf16.mxu1 %v1305_v38 }
  0x66   : > { %1143 = vmatprep.subr.bf16.mxu0 %v1290_v26 }
  0x68   : > { %1174 = vmatpush3.bf16.msra.mxu1 %v1305_v38 }
  0x69   : > { %1144 = vmatpush3.bf16.msra.mxu0 %v1290_v26  ;;  %1175 = vmatprep.subr.bf16.mxu1 %v1306_v39 }
  0x6a   : > { %1145 = vmatprep.subr.bf16.mxu0 %v1291_v28 }
  0x6c   : > { %1176 = vmatpush3.bf16.msra.mxu1 %v1306_v39  ;;  %v676_v39 = vld [vmem:[#allocation2 + $0x18] sm:$0xff] }
  0x6d   : > { %1146 = vmatpush3.bf16.msra.mxu0 %v1291_v28  ;;  %1177 = vmatprep.subr.bf16.mxu1 %v1307_v40 }
  0x70   : > { %1148 = vmatmul.mubr.bf16.vlgmr.msra.gmra.mxu0 %v1293_v31  ;;  %1178 = vmatpush3.bf16.msra.mxu1 %v1307_v40 }
  0x71   : > { %1151 = vmatprep.mubr.bf16.mxu0 %v1294_v32 }
  0x78   : > { %1152 = vmatmul.mubr.bf16.gmra.mxu0 %v1295_v33 }
  0x79   : > { %1155 = vmatprep.mubr.bf16.mxu0 %v1296_v34  ;;  %v675_v34 = vld [vmem:[#allocation2 + $0x58] sm:$0xff] }
  0x80   : > { %1156 = vmatmul.mubr.bf16.gmra.mxu0 %v1297_v35 }
  0x81   : > { %1159 = vmatprep.mubr.bf16.mxu0 %v1298_v36  ;;  %v673_v36 = vld [vmem:[#allocation2 + $0x30] sm:$0xff] }
  0x88   : > { %1160 = vmatmul.mubr.bf16.gmra.mxu0 %v1299_v37 }
 0x130   : > { %v1149_v41 = vpop.f32.mrf.mxu0 }
 0x131   : > { %v603_v47 = vadd.f32 %v1149_v41, %v1067_v43 }
 0x132   : > { %v594_v42 = vpop.f32.mrf.mxu0 }
 0x133   : > { %v595_v45 = vadd.f32 %v1067_v43, %v594_v42  ;;  %v659_v54 = vmax.f32 %v603_v47, 0.0  ;;  %v674_v42 = vld [vmem:[#allocation2] sm:$0xff] }
 0x134   : > { %v1150_v44 = vpop.f32.mrf.mxu0 }
 0x135   : > { %v606_v46 = vadd.f32 %v1150_v44, %v1067_v43  ;;  %v657_v52 = vmax.f32 %v595_v45, 0.0  ;;  %v679_v45 = vld [vmem:[#allocation2 + $0x8] sm:$0xff] }
 0x136   : > { %v597_v48 = vpop.f32.mrf.mxu0 }
 0x137   : > { %v598_v49 = vadd.f32 %v1067_v43, %v597_v48  ;;  %v660_v50 = vmax.f32 %v606_v46, 0.0  ;;  %v677_v48 = vld [vmem:[#allocation2 + $0x50] sm:$0xff] }
 0x138   : > { %v1153_v51 = vpop.f32.mrf.mxu0 }
 0x139   : > { %v658_v53 = vmax.f32 %v598_v49, 0.0  ;;  %v690_v57 = vpack.c.bf16 %v660_v50, %v659_v54  ;;  %v619_v61 = vadd.f32 %v1153_v51, %v1067_v43  ;;  %v680_v51 = vld [vmem:[#allocation2 + $0x48] sm:$0xff] }
 0x13a   : > { %v610_v55 = vpop.f32.mrf.mxu0  ;;  %v678_v54 = vld [vmem:[#allocation2 + $0x68] sm:$0xff] }
 0x13b   : > { %v689_v56 = vpack.c.bf16 %v658_v53, %v657_v52  ;;  %v611_v59 = vadd.f32 %v1067_v43, %v610_v55  ;;  %v663_v4 = vmax.f32 %v619_v61, 0.0 }
 0x13c   : > { %v1154_v58 = vpop.f32.mrf.mxu0 }
 0x13d   : > { %v622_v60 = vadd.f32 %v1154_v58, %v1067_v43  ;;  %1179 = vmatprep.mubr.bf16.mxu1 %v689_v56  ;;  %v661_v2 = vmax.f32 %v611_v59, 0.0 }
 0x13e   : > { %v613_v62 = vpop.f32.mrf.mxu0  ;;  %1180 = vmatmul.mubr.bf16.vlgmr.msra.gmra.mxu1 %v690_v57  ;;  %v683_v57 = vld [vmem:[#allocation2 + $0x10] sm:$0xff] }
 0x13f   : > { %v614_v63 = vadd.f32 %v1067_v43, %v613_v62  ;;  %v664_v0 = vmax.f32 %v622_v60, 0.0  ;;  %v681_v60 = vld [vmem:[#allocation2 + $0x40] sm:$0xff] }
 0x140   : > { %v1157_v1 = vpop.f32.mrf.mxu0 }
 0x141   : > { %v662_v3 = vmax.f32 %v614_v63, 0.0  ;;  %v692_v7 = vpack.c.bf16 %v664_v0, %v663_v4  ;;  %v635_v11 = vadd.f32 %v1157_v1, %v1067_v43  ;;  %v684_v63 = vld [vmem:[#allocation2 + $0x38] sm:$0xff] }
 0x142   : > { %v626_v5 = vpop.f32.mrf.mxu0 }
 0x143   : > { %v691_v6 = vpack.c.bf16 %v662_v3, %v661_v2  ;;  %v627_v9 = vadd.f32 %v1067_v43, %v626_v5  ;;  %v667_v18 = vmax.f32 %v635_v11, 0.0  ;;  %v682_v2 = vld [vmem:[#allocation2 + $0x20] sm:$0xff]  ;;  %v687_v5 = vld [vmem:[#allocation2 + $0x78] sm:$0xff]  ;;  %v688_v11 = vld [vmem:[#allocation2 + $0x28] sm:$0xff] }
 0x144   : > { %v1158_v8 = vpop.f32.mrf.mxu0 }
 0x145   : > { %v638_v10 = vadd.f32 %v1158_v8, %v1067_v43  ;;  %1183 = vmatprep.mubr.bf16.mxu1 %v691_v6  ;;  %v665_v16 = vmax.f32 %v627_v9, 0.0  ;;  %v685_v8 = vld [vmem:[#allocation2 + $0x60] sm:$0xff] }
 0x146   : > { %v629_v12 = vpop.f32.mrf.mxu0  ;;  %1184 = vmatmul.mubr.bf16.gmra.mxu1 %v692_v7 }
 0x147   : > { %v630_v13 = vadd.f32 %v1067_v43, %v629_v12  ;;  %v668_v14 = vmax.f32 %v638_v10, 0.0 }
 0x148   : > { %v1161_v15 = vpop.f32.mrf.mxu0 }
 0x149   : > { %v666_v17 = vmax.f32 %v630_v13, 0.0  ;;  %v694_v21 = vpack.c.bf16 %v668_v14, %v667_v18  ;;  %v651_v25 = vadd.f32 %v1161_v15, %v1067_v43  ;;  %v686_v14 = vld [vmem:[#allocation2 + $0x70] sm:$0xff] }
 0x14a   : > { %v642_v19 = vpop.f32.mrf.mxu0 }
 0x14b   : > { %v693_v20 = vpack.c.bf16 %v666_v17, %v665_v16  ;;  %v643_v23 = vadd.f32 %v1067_v43, %v642_v19  ;;  %v671_v31 = vmax.f32 %v651_v25, 0.0 }
 0x14c   : > { %v1162_v22 = vpop.f32.mrf.mxu0 }
 0x14d   : > { %v654_v24 = vadd.f32 %v1162_v22, %v1067_v43  ;;  %1187 = vmatprep.mubr.bf16.mxu1 %v693_v20  ;;  %v669_v29 = vmax.f32 %v643_v23, 0.0 }
 0x14e   : > { %v645_v26 = vpop.f32.mrf.mxu0  ;;  %1188 = vmatmul.mubr.bf16.gmra.mxu1 %v694_v21 }
 0x14f   : > { %v646_v27 = vadd.f32 %v1067_v43, %v645_v26  ;;  %v672_v28 = vmax.f32 %v654_v24, 0.0 }
 0x151   : > { %v670_v30 = vmax.f32 %v646_v27, 0.0  ;;  %v696_v33 = vpack.c.bf16 %v672_v28, %v671_v31 }
 0x153   : > { %v695_v32 = vpack.c.bf16 %v670_v30, %v669_v29 }
 0x155   : > { %1191 = vmatprep.mubr.bf16.mxu1 %v695_v32 }
 0x156   : > { %1192 = vmatmul.mubr.bf16.gmra.mxu1 %v696_v33 }
 0x1fe   : > { %v1181_v35 = vpop.f32.mrf.mxu1 }
 0x1ff   : > { %v860_v37 = vadd.f32 %v1181_v35, %v675_v34 }
 0x200   : > { %v795_v38 = vpop.f32.mrf.mxu1 }
 0x201   : > { %876 = vst [vmem:[#allocation2 + $0x58] sm:$0xff] %v860_v37  ;;  %v858_v40 = vadd.f32 %v795_v38, %v673_v36 }
 0x202   : > { %v1182_v41 = vpop.f32.mrf.mxu1 }
 0x203   : > { %874 = vst [vmem:[#allocation2 + $0x30] sm:$0xff] %v858_v40  ;;  %v861_v43 = vadd.f32 %v1182_v41, %v676_v39 }
 0x204   : > { %v798_v44 = vpop.f32.mrf.mxu1 }
 0x205   : > { %877 = vst [vmem:[#allocation2 + $0x18] sm:$0xff] %v861_v43  ;;  %v859_v46 = vadd.f32 %v798_v44, %v674_v42 }
 0x206   : > { %v1185_v47 = vpop.f32.mrf.mxu1 }
 0x207   : > { %875 = vst [vmem:[#allocation2] sm:$0xff] %v859_v46  ;;  %v864_v49 = vadd.f32 %v1185_v47, %v679_v45 }
 0x208   : > { %v811_v50 = vpop.f32.mrf.mxu1 }
 0x209   : > { %880 = vst [vmem:[#allocation2 + $0x8] sm:$0xff] %v864_v49  ;;  %v862_v52 = vadd.f32 %v811_v50, %v677_v48 }
 0x20a   : > { %v1186_v53 = vpop.f32.mrf.mxu1 }
 0x20b   : > { %878 = vst [vmem:[#allocation2 + $0x50] sm:$0xff] %v862_v52  ;;  %v865_v55 = vadd.f32 %v1186_v53, %v680_v51 }
 0x20c   : > { %v814_v56 = vpop.f32.mrf.mxu1 }
 0x20d   : > { %881 = vst [vmem:[#allocation2 + $0x48] sm:$0xff] %v865_v55  ;;  %v863_v58 = vadd.f32 %v814_v56, %v678_v54 }
 0x20e   : > { %v1189_v59 = vpop.f32.mrf.mxu1 }
 0x20f   : > { %879 = vst [vmem:[#allocation2 + $0x68] sm:$0xff] %v863_v58  ;;  %v868_v61 = vadd.f32 %v1189_v59, %v683_v57 }
 0x210   : > { %v827_v62 = vpop.f32.mrf.mxu1 }
 0x211   : > { %884 = vst [vmem:[#allocation2 + $0x10] sm:$0xff] %v868_v61  ;;  %v866_v0 = vadd.f32 %v827_v62, %v681_v60 }
 0x212   : > { %v1190_v1 = vpop.f32.mrf.mxu1 }
 0x213   : > { %882 = vst [vmem:[#allocation2 + $0x40] sm:$0xff] %v866_v0  ;;  %v869_v3 = vadd.f32 %v1190_v1, %v684_v63 }
 0x214   : > { %v830_v4 = vpop.f32.mrf.mxu1 }
 0x215   : > { %885 = vst [vmem:[#allocation2 + $0x38] sm:$0xff] %v869_v3  ;;  %v867_v6 = vadd.f32 %v830_v4, %v682_v2 }
 0x216   : > { %v1193_v7 = vpop.f32.mrf.mxu1 }
 0x217   : > { %883 = vst [vmem:[#allocation2 + $0x20] sm:$0xff] %v867_v6  ;;  %v872_v9 = vadd.f32 %v1193_v7, %v687_v5 }
 0x218   : > { %v843_v10 = vpop.f32.mrf.mxu1 }
 0x219   : > { %888 = vst [vmem:[#allocation2 + $0x78] sm:$0xff] %v872_v9  ;;  %v870_v12 = vadd.f32 %v843_v10, %v685_v8 }
 0x21a   : > { %v1194_v13 = vpop.f32.mrf.mxu1 }
 0x21b   : > { %886 = vst [vmem:[#allocation2 + $0x60] sm:$0xff] %v870_v12  ;;  %v873_v15 = vadd.f32 %v1194_v13, %v688_v11  ;;  %893 = sbr.rel (%p1092_p7) target bundleno = 553 (0x229), region = 89 }
 0x21c   : > { %v846_v16 = vpop.f32.mrf.mxu1 }
 0x21d   : > { %889 = vst [vmem:[#allocation2 + $0x28] sm:$0xff] %v873_v15  ;;  %v871_v17 = vadd.f32 %v846_v16, %v686_v14 }
 0x21f   : > { %887 = vst [vmem:[#allocation2 + $0x70] sm:$0xff] %v871_v17 }
 0x220   : > { %v894_v18 = vld [vmem:[#allocation2 + $0x30] sm:$0xff]  ;;  %v895_v19 = vld [vmem:[#allocation2] sm:$0xff]  ;;  %v896_v20 = vld [vmem:[#allocation2 + $0x58] sm:$0xff] }
 0x221   : > { %910 = vst [vmem:[%s1595_s14] sm:$0xff] %v894_v18  ;;  %911 = vst [vmem:[%s1595_s14 + $0x8] sm:$0xff] %v895_v19  ;;  %v897_v21 = vld [vmem:[#allocation2 + $0x18] sm:$0xff]  ;;  %v898_v22 = vld [vmem:[#allocation2 + $0x50] sm:$0xff] }
 0x222   : > { %912 = vst [vmem:[%s1595_s14 + $0x10] sm:$0xff] %v896_v20  ;;  %v899_v23 = vld [vmem:[#allocation2 + $0x68] sm:$0xff]  ;;  %913 = vst [vmem:[%s1595_s14 + $0x18] sm:$0xff] %v897_v21  ;;  %v902_v26 = vld [vmem:[#allocation2 + $0x40] sm:$0xff] }
 0x223   : > { %914 = vst [vmem:[%s1595_s14 + $0x20] sm:$0xff] %v898_v22  ;;  %915 = vst [vmem:[%s1595_s14 + $0x28] sm:$0xff] %v899_v23  ;;  %v900_v24 = vld [vmem:[#allocation2 + $0x8] sm:$0xff]  ;;  %v903_v27 = vld [vmem:[#allocation2 + $0x20] sm:$0xff] }
 0x224   : > { %v901_v25 = vld [vmem:[#allocation2 + $0x48] sm:$0xff]  ;;  %916 = vst [vmem:[%s1595_s14 + $0x30] sm:$0xff] %v900_v24  ;;  %918 = vst [vmem:[%s1595_s14 + $0x40] sm:$0xff] %v902_v26  ;;  %v904_v28 = vld [vmem:[#allocation2 + $0x10] sm:$0xff] }
 0x225   : > { %917 = vst [vmem:[%s1595_s14 + $0x38] sm:$0xff] %v901_v25  ;;  %v905_v29 = vld [vmem:[#allocation2 + $0x38] sm:$0xff]  ;;  %919 = vst [vmem:[%s1595_s14 + $0x48] sm:$0xff] %v903_v27  ;;  %v906_v30 = vld [vmem:[#allocation2 + $0x60] sm:$0xff] }
 0x226   : > { %920 = vst [vmem:[%s1595_s14 + $0x50] sm:$0xff] %v904_v28  ;;  %921 = vst [vmem:[%s1595_s14 + $0x58] sm:$0xff] %v905_v29  ;;  %v907_v31 = vld [vmem:[#allocation2 + $0x70] sm:$0xff]  ;;  %v908_v32 = vld [vmem:[#allocation2 + $0x78] sm:$0xff] }
 0x227   : > { %922 = vst [vmem:[%s1595_s14 + $0x60] sm:$0xff] %v906_v30  ;;  %923 = vst [vmem:[%s1595_s14 + $0x68] sm:$0xff] %v907_v31  ;;  %v909_v33 = vld [vmem:[#allocation2 + $0x28] sm:$0xff] }
 0x228   : > { %924 = vst [vmem:[%s1595_s14 + $0x70] sm:$0xff] %v908_v32  ;;  %925 = vst [vmem:[%s1595_s14 + $0x78] sm:$0xff] %v909_v33 }
 0x229 PF: > { %s1098_s1 = sshll.u32 %s1404_s24, 11  ;;  %s940_s6 = sshll.u32 %s1595_s14, 4  ;;  %s1654_s6 = int_to_ptr.vmem [resolvable:$true] %s940_s6 }
 0x22a   : > { %s1651_s30 = scalar_lea.hbm %s1720_s5, %s1098_s1  ;;  %s1739_s11 = sand.u32 1, %s1384_s19  }
 0x22b   : > { %s1658_s12 = scalar_lea.sflag [#allocation5], %s1739_s11  ;;  %s1308_s16 = scalar_lea.vmem %s1654_s6, 2048 }
 0x22c   : > { %p1309_p8 = scmp.ne.s32.totalorder %s1654_s6, %s1308_s16  ;;  %s1418_s24 = smov [#allocation4]  }
 0x22d   : > { %s1312_s17 = sshll.u32 %s1418_s24, 4  ;;  %s1313_s17 = int_to_ptr.vmem [resolvable:$false] %s1312_s17 }
 0x22e   : > { %p1310_p9 = pnand %p1309_p8, %p1530_p10  ;;  %s1314_s7 = scalar_lea.vmem %s1313_s17, 4096 }
 0x22f   : > { %p1315_p13 = scmp.lt.s32.totalorder %s1654_s6, %s1313_s17  ;;  %p1316_p0 = scmp.lt.s32.totalorder %s1314_s7, %s1308_s16 }
 0x230   : > { %p1311_p11 = pneg %p1310_p9 }
 0x231   : > { %p1317_p1 = por %p1316_p0, %p1315_p13 }
 0x233   : > { %p1318_p2 = pnand %p1317_p1, %p1311_p11 }
 0x235   : > { %1321 = shalt.err (!%p1318_p2)
}
 0x236   : > { %s1322_s14 = scalar_lea.hbm %s1651_s30, 2048  ;;  %s1326_s21 = scalar_lea.hbm %s1720_s5, 4096 }
 0x237   : > { %p1323_p3 = scmp.ne.s32.totalorder %s1651_s30, %s1322_s14  ;;  %p1327_p6 = scmp.lt.s32.totalorder %s1651_s30, %s1720_s5 }
 0x238   : > { %p1328_p7 = scmp.lt.s32.totalorder %s1326_s21, %s1322_s14 }
 0x239   : > { %p1324_p4 = pnand %p1323_p3, %p1530_p10 }
 0x23a   : > { %p1329_p8 = por %p1328_p7, %p1327_p6 }
 0x23b   : > { %p1325_p5 = pneg %p1324_p4 }
 0x23d   : > { %p1330_p9 = pnand %p1329_p8, %p1325_p5 }
 0x23f   : > { %1333 = shalt.err (!%p1330_p9)
}
 0x240   : > { %s1419_s29 = smov 128   ;;  %s1420_s22 = smov 8  }
 0x241   : > { %1195 = dma.vmem_to_hbm [thread:$0]  (%p1530_p10), %s1654_s6, 2048, %s1651_s30, %s1658_s12, %s1419_s29, %s1419_s29, %s1420_s22  }
 0x242 PF: > { %p1201_p11 = scmp.ge.s32.totalorder %s1416_s27, 2  ;;  %s955_s25 = sand.u32 1, %s1380_s18  }
 0x243   : > { %s956_s1 = scalar_lea.sflag [#allocation5], %s955_s25 }
 0x244   : > { %p1198_p13 = pnand %p1201_p11, %p1537_p12 }
 0x246   : > { %p1199_p0 = pneg %p1198_p13 }
 0x248   : > { %1375 = dma.done.wait (%p1199_p0), %s956_s1, 2048  }
 0x249   : > { %1377 = vsyncadd (%p1199_p0), %s956_s1, 4294965248  ;;  %s18_s27 = sadd.s32 1, %s1416_s27   ;;  %s1740_s23 = sld [smem:[#allocation13_spill]] }
 0x24a   : > { %p15_p1 = scmp.ge.s32.totalorder %s18_s27, 6   ;;  %s1741_s21 = sld [smem:[#allocation7_spill]] }
 0x24b   : > { %s1742_s22 = sld [smem:[#allocation12_spill]]  ;;  %s1747_s18 = smov %s1384_s19 }
 0x24c   : > { %s1743_s13 = sld [smem:[#allocation8_spill]]  ;;  %s1748_s19 = smov %s1388_s20 }
 0x24d   : > { %s1744_s24 = sld [smem:[#allocation9_spill]] }
 0x24e   : > { %s1745_s25 = sld [smem:[#allocation10_spill]]  ;;  %17 = sbr.rel (!%p15_p1) target bundleno = 8 (0x8), region = 138 }
 0x24f   : > { %s1746_s26 = sld [smem:[#allocation11_spill]]  ;;  %s1749_s20 = smov %s1740_s23 }
 0x252   : > { %s1750_s23 = smov %s1743_s13 }
 0x253   :  { %961 = vsyncpa [#allocation5], 1 }
 0x254   :  { %963 = vsyncpa [#allocation5 + $0x1], 1 }

</bundles_post_ra>
